<compile_context>
chip_gen: v5e
topology: v5e:2x2
jax: 0.10.0
libtpu: 0.0.40
codegen_flags: <defaults>
</compile_context>

<pallas_src>
import jax
import jax.numpy as jnp
from jax.experimental import pallas as pl
from jax.experimental.pallas import tpu as pltpu


def _round_up(x, m):
    return ((x + m - 1) // m) * m


def lyapunov_kernel(x_ref, w1_ref, b1_ref, w2_ref, b2_ref,
                    w3_ref, b3_ref, w4_ref, b4_ref, out_ref):
    # Batch-in-lanes: all activations are (features, TB).  Matmul inputs are
    # bf16 (weights pre-cast in the wrapper); accumulation and all element-wise
    # work stay f32.
    xt = x_ref[...].astype(jnp.bfloat16)                              # (in, TB)
    # fc1 + relu
    h = jnp.dot(w1_ref[...], xt, preferred_element_type=jnp.float32)
    h = jnp.maximum(h + b1_ref[...], 0.0)                             # (64, TB) f32
    # fc2 + relu
    h = jnp.dot(w2_ref[...], h.astype(jnp.bfloat16),
                preferred_element_type=jnp.float32)
    h = jnp.maximum(h + b2_ref[...], 0.0)                             # (64, TB)
    # fc3 + relu
    h = jnp.dot(w3_ref[...], h.astype(jnp.bfloat16),
                preferred_element_type=jnp.float32)
    h = jnp.maximum(h + b3_ref[...], 0.0)                             # (64, TB)
    # fc4 (no relu)
    y = jnp.dot(w4_ref[...], h.astype(jnp.bfloat16),
                preferred_element_type=jnp.float32)
    y = y + b4_ref[...]                                               # (16, TB)
    # Per-batch-element sum of squares over the 16 output features:
    # cross-sublane XLU reduce -> lane-dense (1, TB) store.
    out_ref[...] = jnp.sum(y * y, axis=0, keepdims=True)


def lyapunov_forward(x, params, *, tb=8192, x_transposed=False):
    """mean(fc4(relu(fc3(relu(fc2(relu(fc1(x)))))))**2).

    x: (B, input_dim) f32, or (input_dim, B) if x_transposed=True (preferred
    for large B — avoids a wrapper-side transpose pass over the input).
    params: PyTorch-layout weights w{1..4} (out, in) and biases b{1..4} (out, 1).
    """
    if x_transposed:
        input_dim, B = x.shape
        xt = x
    else:
        B, input_dim = x.shape
        xt = x.T
    out_dim = params["w4"].shape[0]

    # Lane-aligned batch tile.
    tb = _round_up(max(int(tb), 128), 128)
    b_ceil = _round_up(B, 128)
    # v7x megacore: guarantee >= 2 grid tiles whenever the batch allows, so the
    # "parallel" batch axis shards across both TensorCores (no-op on v5e/v6e).
    if b_ceil >= 256:
        tb = min(tb, _round_up((B + 1) // 2, 128))
    tb = min(tb, b_ceil)
    num_tiles = (B + tb - 1) // tb
    b_pad = num_tiles * tb

    if b_pad != B:
        xt = jnp.pad(xt, ((0, 0), (0, b_pad - B)))
    xt = xt.astype(jnp.float32)

    # bf16 matmul inputs (one-time cast); biases stay f32 for the f32 epilogue.
    ops = (params["w1"].astype(jnp.bfloat16), params["b1"].astype(jnp.float32),
           params["w2"].astype(jnp.bfloat16), params["b2"].astype(jnp.float32),
           params["w3"].astype(jnp.bfloat16), params["b3"].astype(jnp.float32),
           params["w4"].astype(jnp.bfloat16), params["b4"].astype(jnp.float32))

    # Weights/biases: full-shape blocks with a constant index_map -> fetched
    # once and kept VMEM-resident across all grid steps.
    param_specs = [pl.BlockSpec(p.shape, lambda i: (0, 0)) for p in ops]

    grid_spec = pltpu.PrefetchScalarGridSpec(
        num_scalar_prefetch=0,
        grid=(num_tiles,),
        in_specs=[pl.BlockSpec((input_dim, tb), lambda i: (0, i))] + param_specs,
        out_specs=pl.BlockSpec((1, tb), lambda i: (0, i)),
    )

    partial = pl.pallas_call(
        lyapunov_kernel,
        out_shape=jax.ShapeDtypeStruct((1, b_pad), jnp.float32),
        grid_spec=grid_spec,
        compiler_params=pltpu.CompilerParams(
            dimension_semantics=("parallel",)),
    )(xt, *ops)

    # Padded tail columns carry nonzero (bias-driven) outputs -> mask them,
    # then finish the mean over B * out_dim elements.
    return jnp.sum(partial[0, :B]) / (B * out_dim)


def init_params(key, input_dim):
    """nn.Linear-style U(-1/sqrt(fan_in), 1/sqrt(fan_in)) init, PyTorch (out, in) layout."""
    dims = [(input_dim, 64), (64, 64), (64, 64), (64, 16)]
    params = {}
    keys = jax.random.split(key, 2 * len(dims))
    for i, (fan_in, fan_out) in enumerate(dims):
        bound = 1.0 / (fan_in ** 0.5)
        w = jax.random.uniform(keys[2 * i], (fan_out, fan_in),
                               minval=-bound, maxval=bound, dtype=jnp.float32)
        b = jax.random.uniform(keys[2 * i + 1], (fan_out, 1),
                               minval=-bound, maxval=bound, dtype=jnp.float32)
        params[f"w{i + 1}"] = w
        params[f"b{i + 1}"] = b
    return params


def lyapunov_reference(x, params):
    h = jnp.maximum(x @ params["w1"].T + params["b1"][:, 0], 0.0)
    h = jnp.maximum(h @ params["w2"].T + params["b2"][:, 0], 0.0)
    h = jnp.maximum(h @ params["w3"].T + params["b3"][:, 0], 0.0)
    y = h @ params["w4"].T + params["b4"][:, 0]
    return jnp.mean(y ** 2)


if __name__ == "__main__":
    key = jax.random.PRNGKey(0)
    k_x, k_p = jax.random.split(key)

    batch = 2
    input_dim = 4
    # x mimics [uniform(-1,1) state ; uniform(-0.2,0.2) velocity] per row.
    x_pos = jax.random.uniform(k_x, (batch, 2), minval=-1.0, maxval=1.0,
                               dtype=jnp.float32)
    x_vel = jax.random.uniform(jax.random.fold_in(k_x, 1), (batch, 2),
                               minval=-0.2, maxval=0.2, dtype=jnp.float32)
    x = jnp.concatenate([x_pos, x_vel], axis=1)  # (B, 4)

    params = init_params(k_p, input_dim)

    # bf16 matmul inputs -> loosened tolerance vs. the f32 reference.
    v = jax.block_until_ready(lyapunov_forward(x, params))
    v_ref = jax.block_until_ready(lyapunov_reference(x, params))
    assert jnp.allclose(v, v_ref, rtol=5e-2, atol=1e-3), (v, v_ref)

    # Multi-tile + ragged-batch check: 200 rows with TB=128 -> 2 grid steps,
    # padded tail masked in the wrapper.
    x2 = jax.random.uniform(jax.random.fold_in(k_x, 2), (200, input_dim),
                            minval=-1.0, maxval=1.0, dtype=jnp.float32)
    v2 = jax.block_until_ready(lyapunov_forward(x2, params, tb=128))
    v2_ref = jax.block_until_ready(lyapunov_reference(x2, params))
    assert jnp.allclose(v2, v2_ref, rtol=5e-2, atol=1e-3), (v2, v2_ref)

    # Pre-transposed (input_dim, B) input path: skips the wrapper transpose
    # pass and must match the default path.
    v2t = jax.block_until_ready(
        lyapunov_forward(x2.T, params, tb=128, x_transposed=True))
    assert jnp.allclose(v2, v2t, rtol=1e-6, atol=1e-7), (v2, v2t)

    print("KERNEL_OK")
</pallas_src>

<mosaic_0001>
module attributes {stable_mosaic.version = 11 : i64} {
  func.func @lyapunov_kernel(%arg0: i32, %arg1: memref<4x128xf32, #tpu.memory_space<vmem>>, %arg2: memref<64x4xbf16, #tpu.memory_space<vmem>>, %arg3: memref<64x1xf32, #tpu.memory_space<vmem>>, %arg4: memref<64x64xbf16, #tpu.memory_space<vmem>>, %arg5: memref<64x1xf32, #tpu.memory_space<vmem>>, %arg6: memref<64x64xbf16, #tpu.memory_space<vmem>>, %arg7: memref<64x1xf32, #tpu.memory_space<vmem>>, %arg8: memref<16x64xbf16, #tpu.memory_space<vmem>>, %arg9: memref<16x1xf32, #tpu.memory_space<vmem>>, %arg10: memref<1x128xf32, #tpu.memory_space<vmem>>) attributes {dimension_semantics = [#tpu.dimension_semantics<parallel>], iteration_bounds = array<i64: 1>, scalar_prefetch = 0 : i64, scratch_operands = 0 : i64, tpu.core_type = #tpu.core_type<tc>, window_params = [{transform_indices = @transform_0, window_bounds = array<i64: 4, 128>}, {pipeline_mode = #tpu.pipeline_mode<synchronous>, transform_indices = @transform_1, window_bounds = array<i64: 64, 4>}, {pipeline_mode = #tpu.pipeline_mode<synchronous>, transform_indices = @transform_2, window_bounds = array<i64: 64, 1>}, {pipeline_mode = #tpu.pipeline_mode<synchronous>, transform_indices = @transform_3, window_bounds = array<i64: 64, 64>}, {pipeline_mode = #tpu.pipeline_mode<synchronous>, transform_indices = @transform_4, window_bounds = array<i64: 64, 1>}, {pipeline_mode = #tpu.pipeline_mode<synchronous>, transform_indices = @transform_5, window_bounds = array<i64: 64, 64>}, {pipeline_mode = #tpu.pipeline_mode<synchronous>, transform_indices = @transform_6, window_bounds = array<i64: 64, 1>}, {pipeline_mode = #tpu.pipeline_mode<synchronous>, transform_indices = @transform_7, window_bounds = array<i64: 16, 64>}, {pipeline_mode = #tpu.pipeline_mode<synchronous>, transform_indices = @transform_8, window_bounds = array<i64: 16, 1>}, {transform_indices = @transform_9, window_bounds = array<i64: 1, 128>}]} {
    %c0 = arith.constant 0 : index
    %c0_0 = arith.constant 0 : index
    %0 = vector.load %arg1[%c0, %c0_0] : memref<4x128xf32, #tpu.memory_space<vmem>>, vector<4x128xf32>
    %1 = arith.truncf %0 : vector<4x128xf32> to vector<4x128xbf16>
    %c0_1 = arith.constant 0 : index
    %c0_2 = arith.constant 0 : index
    %2 = vector.load %arg2[%c0_1, %c0_2] : memref<64x4xbf16, #tpu.memory_space<vmem>>, vector<64x4xbf16>
    %cst = arith.constant dense<0.000000e+00> : vector<64x128xf32>
    %3 = tpu.matmul %2, %1, %cst {dimension_numbers = #tpu.dot_dimension_numbers<[1], [0], [0], [1], [0, 0, 1, 1], [], []>} : vector<64x4xbf16>, vector<4x128xbf16>, vector<64x128xf32> -> vector<64x128xf32>
    %c0_3 = arith.constant 0 : index
    %c0_4 = arith.constant 0 : index
    %4 = vector.load %arg3[%c0_3, %c0_4] : memref<64x1xf32, #tpu.memory_space<vmem>>, vector<64x1xf32>
    %5 = vector.broadcast %4 : vector<64x1xf32> to vector<64x128xf32>
    %6 = arith.addf %3, %5 : vector<64x128xf32>
    %cst_5 = arith.constant 0.000000e+00 : f32
    %7 = vector.broadcast %cst_5 : f32 to vector<64x128xf32>
    %8 = arith.maximumf %6, %7 : vector<64x128xf32>
    %c0_6 = arith.constant 0 : index
    %c0_7 = arith.constant 0 : index
    %9 = vector.load %arg4[%c0_6, %c0_7] : memref<64x64xbf16, #tpu.memory_space<vmem>>, vector<64x64xbf16>
    %10 = arith.truncf %8 : vector<64x128xf32> to vector<64x128xbf16>
    %cst_8 = arith.constant dense<0.000000e+00> : vector<64x128xf32>
    %11 = tpu.matmul %9, %10, %cst_8 {dimension_numbers = #tpu.dot_dimension_numbers<[1], [0], [0], [1], [0, 0, 1, 1], [], []>} : vector<64x64xbf16>, vector<64x128xbf16>, vector<64x128xf32> -> vector<64x128xf32>
    %c0_9 = arith.constant 0 : index
    %c0_10 = arith.constant 0 : index
    %12 = vector.load %arg5[%c0_9, %c0_10] : memref<64x1xf32, #tpu.memory_space<vmem>>, vector<64x1xf32>
    %13 = vector.broadcast %12 : vector<64x1xf32> to vector<64x128xf32>
    %14 = arith.addf %11, %13 : vector<64x128xf32>
    %cst_11 = arith.constant 0.000000e+00 : f32
    %15 = vector.broadcast %cst_11 : f32 to vector<64x128xf32>
    %16 = arith.maximumf %14, %15 : vector<64x128xf32>
    %c0_12 = arith.constant 0 : index
    %c0_13 = arith.constant 0 : index
    %17 = vector.load %arg6[%c0_12, %c0_13] : memref<64x64xbf16, #tpu.memory_space<vmem>>, vector<64x64xbf16>
    %18 = arith.truncf %16 : vector<64x128xf32> to vector<64x128xbf16>
    %cst_14 = arith.constant dense<0.000000e+00> : vector<64x128xf32>
    %19 = tpu.matmul %17, %18, %cst_14 {dimension_numbers = #tpu.dot_dimension_numbers<[1], [0], [0], [1], [0, 0, 1, 1], [], []>} : vector<64x64xbf16>, vector<64x128xbf16>, vector<64x128xf32> -> vector<64x128xf32>
    %c0_15 = arith.constant 0 : index
    %c0_16 = arith.constant 0 : index
    %20 = vector.load %arg7[%c0_15, %c0_16] : memref<64x1xf32, #tpu.memory_space<vmem>>, vector<64x1xf32>
    %21 = vector.broadcast %20 : vector<64x1xf32> to vector<64x128xf32>
    %22 = arith.addf %19, %21 : vector<64x128xf32>
    %cst_17 = arith.constant 0.000000e+00 : f32
    %23 = vector.broadcast %cst_17 : f32 to vector<64x128xf32>
    %24 = arith.maximumf %22, %23 : vector<64x128xf32>
    %c0_18 = arith.constant 0 : index
    %c0_19 = arith.constant 0 : index
    %25 = vector.load %arg8[%c0_18, %c0_19] : memref<16x64xbf16, #tpu.memory_space<vmem>>, vector<16x64xbf16>
    %26 = arith.truncf %24 : vector<64x128xf32> to vector<64x128xbf16>
    %cst_20 = arith.constant dense<0.000000e+00> : vector<16x128xf32>
    %27 = tpu.matmul %25, %26, %cst_20 {dimension_numbers = #tpu.dot_dimension_numbers<[1], [0], [0], [1], [0, 0, 1, 1], [], []>} : vector<16x64xbf16>, vector<64x128xbf16>, vector<16x128xf32> -> vector<16x128xf32>
    %c0_21 = arith.constant 0 : index
    %c0_22 = arith.constant 0 : index
    %28 = vector.load %arg9[%c0_21, %c0_22] : memref<16x1xf32, #tpu.memory_space<vmem>>, vector<16x1xf32>
    %29 = vector.broadcast %28 : vector<16x1xf32> to vector<16x128xf32>
    %30 = arith.addf %27, %29 : vector<16x128xf32>
    %31 = arith.mulf %30, %30 : vector<16x128xf32>
    %cst_23 = arith.constant dense<0.000000e+00> : vector<128xf32>
    %32 = vector.multi_reduction <add>, %31, %cst_23 [0] : vector<16x128xf32> to vector<128xf32>
    %33 = vector.shape_cast %32 : vector<128xf32> to vector<1x128xf32>
    %c0_24 = arith.constant 0 : index
    %c0_25 = arith.constant 0 : index
    %34 = vector.load %arg10[%c0_24, %c0_25] : memref<1x128xf32, #tpu.memory_space<vmem>>, vector<1x128xf32>
    tpu.vector_store %arg10[%c0_24, %c0_25], %33 {strides = array<i32>} : memref<1x128xf32, #tpu.memory_space<vmem>>, vector<1x128xf32>,
    return
  }
  func.func @transform_0(%arg0: i32) -> (i32, i32) {
    %c0_i32 = arith.constant 0 : i32
    %c0_i32_0 = arith.constant 0 : i32
    return %c0_i32, %arg0 : i32, i32
  }
  func.func @transform_1(%arg0: i32) -> (i32, i32) {
    %c0_i32 = arith.constant 0 : i32
    %c0_i32_0 = arith.constant 0 : i32
    %c0_i32_1 = arith.constant 0 : i32
    return %c0_i32, %c0_i32_0 : i32, i32
  }
  func.func @transform_2(%arg0: i32) -> (i32, i32) {
    %c0_i32 = arith.constant 0 : i32
    %c0_i32_0 = arith.constant 0 : i32
    %c0_i32_1 = arith.constant 0 : i32
    return %c0_i32, %c0_i32_0 : i32, i32
  }
  func.func @transform_3(%arg0: i32) -> (i32, i32) {
    %c0_i32 = arith.constant 0 : i32
    %c0_i32_0 = arith.constant 0 : i32
    %c0_i32_1 = arith.constant 0 : i32
    return %c0_i32, %c0_i32_0 : i32, i32
  }
  func.func @transform_4(%arg0: i32) -> (i32, i32) {
    %c0_i32 = arith.constant 0 : i32
    %c0_i32_0 = arith.constant 0 : i32
    %c0_i32_1 = arith.constant 0 : i32
    return %c0_i32, %c0_i32_0 : i32, i32
  }
  func.func @transform_5(%arg0: i32) -> (i32, i32) {
    %c0_i32 = arith.constant 0 : i32
    %c0_i32_0 = arith.constant 0 : i32
    %c0_i32_1 = arith.constant 0 : i32
    return %c0_i32, %c0_i32_0 : i32, i32
  }
  func.func @transform_6(%arg0: i32) -> (i32, i32) {
    %c0_i32 = arith.constant 0 : i32
    %c0_i32_0 = arith.constant 0 : i32
    %c0_i32_1 = arith.constant 0 : i32
    return %c0_i32, %c0_i32_0 : i32, i32
  }
  func.func @transform_7(%arg0: i32) -> (i32, i32) {
    %c0_i32 = arith.constant 0 : i32
    %c0_i32_0 = arith.constant 0 : i32
    %c0_i32_1 = arith.constant 0 : i32
    return %c0_i32, %c0_i32_0 : i32, i32
  }
  func.func @transform_8(%arg0: i32) -> (i32, i32) {
    %c0_i32 = arith.constant 0 : i32
    %c0_i32_0 = arith.constant 0 : i32
    %c0_i32_1 = arith.constant 0 : i32
    return %c0_i32, %c0_i32_0 : i32, i32
  }
  func.func @transform_9(%arg0: i32) -> (i32, i32) {
    %c0_i32 = arith.constant 0 : i32
    %c0_i32_0 = arith.constant 0 : i32
    return %c0_i32, %arg0 : i32, i32
  }
}

</mosaic_0001>

<bundles_post_ra>
// kernel: tpu_custom_call.1
= control target key start
LH: loop header
LB: loop body
LE: loop exit
PB: predicated region body
PF: predicated region fallthrough
CT: control target
= control target key end

     0   :  { %vm125_vm0 = vcmask 1041408   ;;  %v600_v3 = vmov 0   ;;  %vm112_vm1 = vcmask 31744   ;;  %s788_s0 = inlined_call_operand.vmem [shape: f32[4,128], index: 0, kind: input, shape index: {}]   ;;  %s789_s1 = inlined_call_operand.vmem [shape: bf16[64,4], index: 1, kind: input, shape index: {}]   ;;  %s790_s2 = inlined_call_operand.vmem [shape: f32[64,1], index: 2, kind: input, shape index: {}]   ;;  %s791_s3 = inlined_call_operand.vmem [shape: bf16[64,64], index: 3, kind: input, shape index: {}]   ;;  %s792_s4 = inlined_call_operand.vmem [shape: f32[64,1], index: 4, kind: input, shape index: {}]   ;;  %s793_s5 = inlined_call_operand.vmem [shape: bf16[64,64], index: 5, kind: input, shape index: {}]   ;;  %s794_s6 = inlined_call_operand.vmem [shape: f32[64,1], index: 6, kind: input, shape index: {}]   ;;  %s795_s7 = inlined_call_operand.vmem [shape: bf16[16,64], index: 7, kind: input, shape index: {}]   ;;  %s796_s8 = inlined_call_operand.vmem [shape: f32[16,1], index: 8, kind: input, shape index: {}]   ;;  %s797_s9 = inlined_call_operand.hbm [shape: f32[1,128], index: 9, kind: output, shape index: {}]  }
   0x1   :  { %v50_v0 = vld [vmem:[%s790_s2 + $0x30] sm:$0xff]  ;;  %v34_v1 = vld [vmem:[%s788_s0] sm:$0xf]  ;;  %571 = vset.pattern.permute.xlu0 %v600_v3  ;;  %572 = vset.pattern.permute.xlu1 %v600_v3 }
   0x2   :  { %v48_v2 = vld [vmem:[%s790_s2 + $0x20] sm:$0xff]  ;;  %v35_v4 = vpack.c.bf16 %v34_v1, %v34_v1  ;;  %84 = vperm.xlu0 %571, %v50_v0   ;;  %573 = vset.pattern.permute.xlu2 %v600_v3 }
   0x3   :  { %74 = vperm.xlu1 %572, %v48_v2   ;;  %v556_v6 = vld [vmem:[%s789_s1] sm:$0xff] }
   0x4   :  { %v127_v5 = vsel %vm125_vm0, %v35_v4, 0 }
   0x5   :  { %136 = vmatpush.bf16.msra.mxu0 %v127_v5 }
   0x6   :  { %14 = vsyncpa [#allocation3], 0  ;;  %v51_v7 = vld [vmem:[%s790_s2 + $0x38] sm:$0xff]  ;;  %v49_v8 = vld [vmem:[%s790_s2 + $0x28] sm:$0xff]  ;;  %vm246_vm2 = vcmask 523264   ;;  %s601_s14 = smov [#allocation2]  }
   0x7   :  { %v46_v9 = vld [vmem:[%s790_s2 + $0x10] sm:$0xff]  ;;  %v47_v10 = vld [vmem:[%s790_s2 + $0x18] sm:$0xff]  ;;  %v44_v11 = vld [vmem:[%s790_s2] sm:$0xff]  ;;  %s482_s16 = sshll.u32 %s797_s9, 4  ;;  %s483_s16 = int_to_ptr.hbm [resolvable:$true] %s482_s16 }
   0x8   :  { %507 = vmatmul.msk.bf16.vlgmr.msra.gmra.mxu0 %vm112_vm1, %v556_v6  ;;  %64 = vperm.xlu2 %573, %v46_v9   ;;  %v45_v12 = vld [vmem:[%s790_s2 + $0x8] sm:$0xff]  ;;  %v185_v14 = vld [vmem:[%s792_s4 + $0x38] sm:$0xff]  ;;  %v182_v15 = vld [vmem:[%s792_s4 + $0x20] sm:$0xff]  ;;  %s480_s2 = sshll.u32 %s601_s14, 4  ;;  %s481_s2 = int_to_ptr.vmem [resolvable:$true] %s480_s2 }
   0x9   :  { %v557_v13 = vld [vmem:[%s789_s1 + $0x8] sm:$0xff]  ;;  %v184_v16 = vld [vmem:[%s792_s4 + $0x30] sm:$0xff]  ;;  %v181_v19 = vld [vmem:[%s792_s4 + $0x18] sm:$0xff] }
   0xa   :  { %89 = vperm.xlu0 %571, %v51_v7   ;;  %v183_v17 = vld [vmem:[%s792_s4 + $0x28] sm:$0xff]  ;;  %v180_v18 = vld [vmem:[%s792_s4 + $0x10] sm:$0xff]  ;;  %v178_v21 = vld [vmem:[%s792_s4] sm:$0xff] }
   0xb   :  { %79 = vperm.xlu1 %572, %v49_v8   ;;  %v558_v20 = vld [vmem:[%s789_s1 + $0x10] sm:$0xff]  ;;  %v179_v22 = vld [vmem:[%s792_s4 + $0x8] sm:$0xff]  ;;  %v315_v24 = vld [vmem:[%s794_s6 + $0x38] sm:$0xff] }
   0xc   :  { %v314_v23 = vld [vmem:[%s794_s6 + $0x30] sm:$0xff]  ;;  %v312_v25 = vld [vmem:[%s794_s6 + $0x20] sm:$0xff]  ;;  %v313_v26 = vld [vmem:[%s794_s6 + $0x28] sm:$0xff] }
   0xd   :  { %v559_v27 = vld [vmem:[%s789_s1 + $0x18] sm:$0xff]  ;;  %v310_v28 = vld [vmem:[%s794_s6 + $0x10] sm:$0xff]  ;;  %v308_v30 = vld [vmem:[%s794_s6] sm:$0xff] }
   0xe   :  { %v311_v29 = vld [vmem:[%s794_s6 + $0x18] sm:$0xff]  ;;  %v309_v31 = vld [vmem:[%s794_s6 + $0x8] sm:$0xff]  ;;  %v431_v32 = vld [vmem:[%s796_s8] sm:$0xff] }
   0xf   :  { %v432_v33 = vld [vmem:[%s796_s8 + $0x8] sm:$0xff]  ;;  %v560_v6 = vld [vmem:[%s791_s3] sm:$0xff]  ;;  %v562_v8 = vld [vmem:[%s791_s3 + $0x10] sm:$0xff] }
  0x10   :  { %69 = vperm.xlu2 %573, %v47_v10   ;;  %v561_v7 = vld [vmem:[%s791_s3 + $0x8] sm:$0xff]  ;;  %v563_v9 = vld [vmem:[%s791_s3 + $0x18] sm:$0xff] }
  0x12   :  { %54 = vperm.xlu0 %571, %v44_v11  }
  0x13   :  { %59 = vperm.xlu1 %572, %v45_v12  }
  0x18   :  { %508 = vmatmul.msk.bf16.gmra.mxu0 %vm112_vm1, %v557_v13  ;;  %218 = vperm.xlu2 %573, %v184_v16  }
  0x1a   :  { %223 = vperm.xlu0 %571, %v185_v14  }
  0x1b   :  { %208 = vperm.xlu1 %572, %v182_v15  }
  0x20   :  { %213 = vperm.xlu2 %573, %v183_v17  }
  0x22   :  { %198 = vperm.xlu0 %571, %v180_v18  }
  0x23   :  { %203 = vperm.xlu1 %572, %v181_v19  }
  0x28   :  { %509 = vmatmul.msk.bf16.gmra.mxu0 %vm112_vm1, %v558_v20  ;;  %188 = vperm.xlu2 %573, %v178_v21  }
  0x2a   :  { %193 = vperm.xlu0 %571, %v179_v22  }
  0x2b   :  { %348 = vperm.xlu1 %572, %v314_v23  }
  0x30   :  { %353 = vperm.xlu2 %573, %v315_v24  }
  0x32   :  { %338 = vperm.xlu0 %571, %v312_v25  }
  0x33   :  { %343 = vperm.xlu1 %572, %v313_v26  }
  0x38   :  { %510 = vmatmul.msk.bf16.gmra.mxu0 %vm112_vm1, %v559_v27  ;;  %328 = vperm.xlu2 %573, %v310_v28  }
  0x3a   :  { %333 = vperm.xlu0 %571, %v311_v29  }
  0x3b   :  { %318 = vperm.xlu1 %572, %v308_v30  }
  0x40   :  { %323 = vperm.xlu2 %573, %v309_v31  }
  0x42   :  { %435 = vperm.xlu0 %571, %v431_v32  }
  0x43   :  { %440 = vperm.xlu1 %572, %v432_v33  }
  0x62   :  { %v65_v43 = vpop.permute.xlu2 %64 }
  0x6a   :  { %v70_v53 = vpop.permute.xlu2 %69 }
  0x72   :  { %v219_v17 = vpop.permute.xlu2 %218 }
  0x74   :  { %v85_v40 = vpop.permute.xlu0 %84 }
  0x75   :  { %v75_v41 = vpop.permute.xlu1 %74 }
  0x7a   :  { %v214_v22 = vpop.permute.xlu2 %213 }
  0x7c   :  { %v90_v44 = vpop.permute.xlu0 %89 }
  0x7d   :  { %v80_v45 = vpop.permute.xlu1 %79 }
  0x84   :  { %v55_v59 = vpop.permute.xlu0 %54 }
  0x85   :  { %v138_v34 = vpop.f32.mrf.mxu0  ;;  %v60_v60 = vpop.permute.xlu1 %59 }
  0x86   :  { %v139_v0 = vadd.f32 %v138_v34, %v55_v59 }
  0x88   :  { %v158_v4 = vmax.f32 %v139_v0, 0.0 }
  0x8c   :  { %v224_v16 = vpop.permute.xlu0 %223 }
  0x8d   :  { %v140_v35 = vpop.f32.mrf.mxu0  ;;  %v209_v19 = vpop.permute.xlu1 %208 }
  0x8e   :  { %v141_v61 = vadd.f32 %v140_v35, %v60_v60 }
  0x90   :  { %v159_v2 = vmax.f32 %v141_v61, 0.0 }
  0x92   :  { %v174_v5 = vpack.c.bf16 %v159_v2, %v158_v4 }
  0x94   :  { %v199_v20 = vpop.permute.xlu0 %198 }
  0x95   :  { %v143_v36 = vpop.f32.mrf.mxu0  ;;  %v204_v29 = vpop.permute.xlu1 %203 }
  0x96   :  { %v144_v57 = vadd.f32 %v143_v36, %v65_v43 }
  0x98   :  { %v160_v1 = vmax.f32 %v144_v57, 0.0 }
  0x9c   :  { %v194_v35 = vpop.permute.xlu0 %193 }
  0x9d   :  { %v145_v37 = vpop.f32.mrf.mxu0  ;;  %v349_v57 = vpop.permute.xlu1 %348 }
  0x9e   :  { %v146_v54 = vadd.f32 %v145_v37, %v70_v53 }
  0xa0   :  { %v161_v62 = vmax.f32 %v146_v54, 0.0 }
  0xa2   :  { %v175_v3 = vpack.c.bf16 %v161_v62, %v160_v1 }
  0xa4   :  { %v339_v59 = vpop.permute.xlu0 %338 }
  0xa5   :  { %v148_v38 = vpop.f32.mrf.mxu0  ;;  %v344_v62 = vpop.permute.xlu1 %343 }
  0xa6   :  { %v149_v50 = vadd.f32 %v148_v38, %v75_v41 }
  0xa8   :  { %v162_v58 = vmax.f32 %v149_v50, 0.0 }
  0xad   :  { %v150_v39 = vpop.f32.mrf.mxu0 }
  0xae   :  { %v151_v48 = vadd.f32 %v150_v39, %v80_v45  ;;  %v189_v39 = vpop.permute.xlu2 %188 }
  0xb0   :  { %v163_v55 = vmax.f32 %v151_v48, 0.0  ;;  %v566_v48 = vld [vmem:[%s793_s5 + $0x10] sm:$0xff] }
  0xb2   :  { %v176_v63 = vpack.c.bf16 %v163_v55, %v162_v58 }
  0xb5   :  { %v153_v42 = vpop.f32.mrf.mxu0 }
  0xb6   :  { %v154_v46 = vadd.f32 %v153_v42, %v85_v40 }
  0xb8   :  { %v164_v51 = vmax.f32 %v154_v46, 0.0  ;;  %v564_v46 = vld [vmem:[%s793_s5] sm:$0xff] }
  0xbd   :  { %v155_v47 = vpop.f32.mrf.mxu0 }
  0xbe   :  { %v156_v49 = vadd.f32 %v155_v47, %v90_v44  ;;  %v565_v47 = vld [vmem:[%s793_s5 + $0x8] sm:$0xff] }
  0xc0   :  { %v165_v52 = vmax.f32 %v156_v49, 0.0  ;;  %v567_v49 = vld [vmem:[%s793_s5 + $0x18] sm:$0xff] }
  0xc2   :  { %v177_v56 = vpack.c.bf16 %v165_v52, %v164_v51 }
  0xc4   :  { %263 = vmatpush.bf16.msra.mxu1 %v177_v56  ;;  %v354_v56 = vpop.permute.xlu2 %353 }
  0xc8   :  { %264 = vmatpush.bf16.msra.mxu1 %v176_v63 }
  0xcc   :  { %265 = vmatpush.bf16.msra.mxu1 %v175_v3  ;;  %v329_v60 = vpop.permute.xlu2 %328 }
  0xd0   :  { %266 = vmatpush.bf16.msra.mxu1 %v174_v5  ;;  %v334_v5 = vpop.permute.xlu0 %333 }
  0xd3   :  { %527 = vmatmul.msk.bf16.vlgmr.msra.gmra.mxu1 %vm246_vm2, %v560_v6 }
  0xe3   :  { %528 = vmatmul.msk.bf16.gmra.mxu1 %vm246_vm2, %v561_v7 }
  0xf3   :  { %529 = vmatmul.msk.bf16.gmra.mxu1 %vm246_vm2, %v562_v8 }
 0x103   :  { %530 = vmatmul.msk.bf16.gmra.mxu1 %vm246_vm2, %v563_v9 }
 0x150   :  { %v268_v10 = vpop.f32.mrf.mxu1 }
 0x151   :  { %v269_v40 = vadd.f32 %v268_v10, %v189_v39 }
 0x153   :  { %v288_v44 = vmax.f32 %v269_v40, 0.0 }
 0x158   :  { %v270_v11 = vpop.f32.mrf.mxu1 }
 0x159   :  { %v271_v36 = vadd.f32 %v270_v11, %v194_v35  ;;  %v324_v11 = vpop.permute.xlu2 %323 }
 0x15b   :  { %v289_v42 = vmax.f32 %v271_v36, 0.0 }
 0x15d   :  { %v304_v45 = vpack.c.bf16 %v289_v42, %v288_v44 }
 0x160   :  { %v273_v12 = vpop.f32.mrf.mxu1 }
 0x161   :  { %v274_v33 = vadd.f32 %v273_v12, %v199_v20 }
 0x163   :  { %v290_v41 = vmax.f32 %v274_v33, 0.0 }
 0x168   :  { %v275_v13 = vpop.f32.mrf.mxu1 }
 0x169   :  { %v276_v30 = vadd.f32 %v275_v13, %v204_v29 }
 0x16b   :  { %v291_v37 = vmax.f32 %v276_v30, 0.0 }
 0x16d   :  { %v305_v43 = vpack.c.bf16 %v291_v37, %v290_v41 }
 0x170   :  { %v278_v14 = vpop.f32.mrf.mxu1 }
 0x171   :  { %v279_v26 = vadd.f32 %v278_v14, %v209_v19 }
 0x173   :  { %v292_v34 = vmax.f32 %v279_v26, 0.0 }
 0x178   :  { %v280_v15 = vpop.f32.mrf.mxu1 }
 0x179   :  { %v281_v24 = vadd.f32 %v280_v15, %v214_v22  ;;  %v319_v15 = vpop.permute.xlu1 %318  ;;  %v568_v22 = vld [vmem:[%s795_s7] sm:$0xff] }
 0x17b   :  { %v293_v31 = vmax.f32 %v281_v24, 0.0  ;;  %v436_v24 = vpop.permute.xlu0 %435 }
 0x17d   :  { %v306_v38 = vpack.c.bf16 %v293_v31, %v292_v34 }
 0x180   :  { %v283_v18 = vpop.f32.mrf.mxu1 }
 0x181   :  { %v284_v21 = vadd.f32 %v283_v18, %v219_v17  ;;  %v441_v26 = vpop.permute.xlu1 %440 }
 0x183   :  { %v294_v27 = vmax.f32 %v284_v21, 0.0 }
 0x188   :  { %v285_v23 = vpop.f32.mrf.mxu1 }
 0x189   :  { %v286_v25 = vadd.f32 %v285_v23, %v224_v16 }
 0x18b   :  { %v295_v28 = vmax.f32 %v286_v25, 0.0 }
 0x18d   :  { %v307_v32 = vpack.c.bf16 %v295_v28, %v294_v27 }
 0x18f   :  { %392 = vmatpush.bf16.msra.mxu2 %v307_v32 }
 0x193   :  { %393 = vmatpush.bf16.msra.mxu2 %v306_v38 }
 0x197   :  { %394 = vmatpush.bf16.msra.mxu2 %v305_v43 }
 0x19b   :  { %395 = vmatpush.bf16.msra.mxu2 %v304_v45 }
 0x19e   :  { %547 = vmatmul.msk.bf16.vlgmr.msra.gmra.mxu2 %vm246_vm2, %v564_v46 }
 0x1ae   :  { %548 = vmatmul.msk.bf16.gmra.mxu2 %vm246_vm2, %v565_v47 }
 0x1be   :  { %549 = vmatmul.msk.bf16.gmra.mxu2 %vm246_vm2, %v566_v48 }
 0x1ce   :  { %550 = vmatmul.msk.bf16.gmra.mxu2 %vm246_vm2, %v567_v49 }
 0x221   :  { %v397_v50 = vpop.f32.mrf.mxu2 }
 0x222   :  { %v398_v16 = vadd.f32 %v397_v50, %v319_v15 }
 0x224   :  { %v417_v20 = vmax.f32 %v398_v16, 0.0 }
 0x229   :  { %v399_v51 = vpop.f32.mrf.mxu2 }
 0x22a   :  { %v400_v12 = vadd.f32 %v399_v51, %v324_v11 }
 0x22c   :  { %v418_v18 = vmax.f32 %v400_v12, 0.0 }
 0x22e   :  { %v427_v21 = vpack.c.bf16 %v418_v18, %v417_v20 }
 0x231   :  { %v402_v52 = vpop.f32.mrf.mxu2 }
 0x232   :  { %v403_v9 = vadd.f32 %v402_v52, %v329_v60 }
 0x234   :  { %v419_v17 = vmax.f32 %v403_v9, 0.0 }
 0x239   :  { %v404_v53 = vpop.f32.mrf.mxu2 }
 0x23a   :  { %v405_v6 = vadd.f32 %v404_v53, %v334_v5 }
 0x23c   :  { %v420_v13 = vmax.f32 %v405_v6, 0.0 }
 0x23e   :  { %v428_v19 = vpack.c.bf16 %v420_v13, %v419_v17 }
 0x241   :  { %v407_v54 = vpop.f32.mrf.mxu2 }
 0x242   :  { %v408_v2 = vadd.f32 %v407_v54, %v339_v59 }
 0x244   :  { %v421_v10 = vmax.f32 %v408_v2, 0.0 }
 0x249   :  { %v409_v55 = vpop.f32.mrf.mxu2 }
 0x24a   :  { %v410_v0 = vadd.f32 %v409_v55, %v344_v62 }
 0x24c   :  { %v422_v7 = vmax.f32 %v410_v0, 0.0 }
 0x24e   :  { %v429_v14 = vpack.c.bf16 %v422_v7, %v421_v10 }
 0x251   :  { %v412_v58 = vpop.f32.mrf.mxu2 }
 0x252   :  { %v413_v61 = vadd.f32 %v412_v58, %v349_v57 }
 0x254   :  { %v423_v3 = vmax.f32 %v413_v61, 0.0 }
 0x259   :  { %v414_v63 = vpop.f32.mrf.mxu2 }
 0x25a   :  { %v415_v1 = vadd.f32 %v414_v63, %v354_v56 }
 0x25c   :  { %v424_v4 = vmax.f32 %v415_v1, 0.0 }
 0x25e   :  { %v430_v8 = vpack.c.bf16 %v424_v4, %v423_v3 }
 0x260   :  { %455 = vmatpush.bf16.msra.mxu3 %v430_v8 }
 0x264   :  { %456 = vmatpush.bf16.msra.mxu3 %v429_v14 }
 0x268   :  { %457 = vmatpush.bf16.msra.mxu3 %v428_v19 }
 0x26c   :  { %458 = vmatpush.bf16.msra.mxu3 %v427_v21 }
 0x26f   :  { %555 = vmatmul.msk.bf16.vlgmr.msra.gmra.mxu3 %vm246_vm2, %v568_v22 }
 0x2f2   :  { %v460_v23 = vpop.f32.mrf.mxu3 }
 0x2f3   :  { %v461_v25 = vadd.f32 %v460_v23, %v436_v24 }
 0x2f5   :  { %v465_v29 = vmul.f32 %v461_v25, %v461_v25 }
 0x2fa   :  { %v462_v27 = vpop.f32.mrf.mxu3 }
 0x2fb   :  { %v463_v28 = vadd.f32 %v462_v27, %v441_v26 }
 0x2fd   :  { %v466_v30 = vmul.f32 %v463_v28, %v463_v28 }
 0x2ff   :  { %v467_v31 = vadd.f32 %v466_v30, %v465_v29 }
 0x301   :  { %v468_v32 = vrot.slane %v467_v31, 4 }
 0x303   :  { %v469_v33 = vadd.f32 %v468_v32, %v467_v31 }
 0x305   :  { %v470_v34 = vrot.slane %v469_v33, 2 }
 0x307   :  { %v471_v35 = vadd.f32 %v470_v34, %v469_v33 }
 0x309   :  { %v472_v36 = vrot.slane %v471_v35, 1 }
 0x30b   :  { %v473_v37 = vadd.f32 %v472_v36, %v471_v35 }
 0x30d   :  { %474 = vst [vmem:[#allocation2] sm:$0x1] %v473_v37 }
 0x30e   :  { %485 = dma.vmem_to_hbm [thread:$0]  %s481_s2, 16, %s483_s16, [#allocation3]  }
 0x30f   :  { %598 = dma.done.wait [#allocation3], 16  }
 0x310   :  { %599 = vsyncadd [#allocation3], 4294967280 }
 0x311   :  { %490 = vsyncpa [#allocation3], 1 }

</bundles_post_ra>
